<compile_context>
chip_gen: v6e
topology: v6e:2x2x1
jax: 0.10.0
libtpu: 0.0.40
codegen_flags: <defaults>
</compile_context>

<pallas_src>
import jax
import jax.numpy as jnp
from jax.experimental import pallas as pl
from jax.experimental.pallas import tpu as pltpu

SUBLANE_BF16 = 16  # bf16 packs 16 sublanes per vreg


def _round_up(x, m):
    return ((x + m - 1) // m) * m


def _default_elementwise_dtype():
    """bf16 bias-add/ReLU on v6e/v7x (bf16 VALU); f32 on v5e and older."""
    try:
        kind = jax.devices()[0].device_kind.lower()
    except Exception:
        return jnp.float32
    if any(old in kind for old in ("v2", "v3", "v4", "v5")):
        return jnp.float32
    return jnp.bfloat16


def _pick_batch_tile(B, *, max_tb=2048, align=SUBLANE_BF16, min_tiles=2):
    """Batch tile sized from the batch (not a fixed constant) so padding waste
    stays small, capped at max_tb, 16-sublane aligned, and split into >=2
    tiles when the batch is large enough so both v7x TensorCores get work."""
    B_al = _round_up(max(B, 1), align)
    if B_al <= align * min_tiles:
        return B_al  # too small to split usefully: one tile covers the batch
    n_tiles = max(pl.cdiv(B_al, max_tb), min_tiles)
    return _round_up(pl.cdiv(B_al, n_tiles), align)


def _make_kernel(ew_dtype):
    """Fused fc1->ReLU->fc2->ReLU->fc3. bf16 MXU matmuls, f32 accumulate;
    elementwise chain in `ew_dtype` (bf16 on v6e/v7x, f32 on v5e)."""

    def kernel(x_ref, w1_ref, b1_ref, w2_ref, b2_ref, w3_ref, b3_ref, o_ref):
        x = x_ref[...].astype(jnp.bfloat16)          # cast on the VMEM tile
        # fc1 + bias + ReLU
        h1 = jnp.dot(x, w1_ref[...], preferred_element_type=jnp.float32)
        h1 = jnp.maximum(h1.astype(ew_dtype) + b1_ref[...].astype(ew_dtype), 0)
        # fc2 + bias + ReLU
        h2 = jnp.dot(h1.astype(jnp.bfloat16), w2_ref[...],
                     preferred_element_type=jnp.float32)
        h2 = jnp.maximum(h2.astype(ew_dtype) + b2_ref[...].astype(ew_dtype), 0)
        # fc3 (no activation), f32 bias-add, store at real output width
        out = jnp.dot(h2.astype(jnp.bfloat16), w3_ref[...],
                      preferred_element_type=jnp.float32)
        o_ref[...] = (out + b3_ref[...]).astype(o_ref.dtype)

    return kernel


def prepare_params(params):
    """One-time (hoisted out of the forward path): weights -> bf16 [in, out],
    biases -> f32 row vectors (1, out)."""
    prep = {}
    for i in (1, 2, 3):
        prep[f"w{i}"] = jnp.asarray(params[f"w{i}"], jnp.bfloat16)
        prep[f"b{i}"] = jnp.asarray(params[f"b{i}"], jnp.float32).reshape(1, -1)
    return prep


def qnetwork_forward(x, prepared, *, max_tb=2048, elementwise_dtype=None):
    """x: [B, input_dim] float32.  `prepared` = prepare_params(params)."""
    w1, b1 = prepared["w1"], prepared["b1"]
    w2, b2 = prepared["w2"], prepared["b2"]
    w3, b3 = prepared["w3"], prepared["b3"]

    B, D_in = x.shape
    H = w1.shape[1]
    D_out = w3.shape[1]

    if elementwise_dtype is None:
        elementwise_dtype = _default_elementwise_dtype()

    # Batch tiling: only the batch axis is padded; feature dims stay at their
    # true widths (full-extent last dims are legal BlockSpec shapes).
    TB = _pick_batch_tile(B, max_tb=max_tb)
    B_p = _round_up(B, TB)
    x_p = x if B_p == B else jnp.pad(x, ((0, B_p - B), (0, 0)))
    grid = (B_p // TB,)

    def const(shape):
        # Resident block: same (0, 0) block every grid step -> fetched once.
        return pl.BlockSpec(shape, lambda i: tuple(0 for _ in shape))

    # Real (unpadded) cost numbers for XLA's scheduler.
    flops = 2 * B * (D_in * H + H * H + H * D_out)
    bytes_accessed = (
        B * D_in * 4                                  # x (f32 read)
        + (D_in * H + H * H + H * D_out) * 2          # bf16 weights
        + (2 * H + D_out) * 4                         # f32 biases
        + B * D_out * 4                               # f32 output
    )

    out_p = pl.pallas_call(
        _make_kernel(elementwise_dtype),
        out_shape=jax.ShapeDtypeStruct((B_p, D_out), jnp.float32),
        grid_spec=pltpu.PrefetchScalarGridSpec(
            num_scalar_prefetch=0,
            grid=grid,
            in_specs=[
                pl.BlockSpec((TB, D_in), lambda i: (i, 0)),   # x batch tile (f32)
                const((D_in, H)), const((1, H)),              # fc1 (resident)
                const((H, H)),    const((1, H)),              # fc2 (resident)
                const((H, D_out)), const((1, D_out)),         # fc3 (resident)
            ],
            out_specs=pl.BlockSpec((TB, D_out), lambda i: (i, 0)),
        ),
        compiler_params=pltpu.CompilerParams(
            dimension_semantics=("parallel",),   # v7x: batch tiles over 2 TCs
        ),
        cost_estimate=pl.CostEstimate(
            flops=flops, transcendentals=0, bytes_accessed=bytes_accessed),
    )(x_p, w1, b1, w2, b2, w3, b3)

    return out_p if B_p == B else out_p[:B]


def init_params(key, input_dim, output_dim, hidden_dim=128):
    """Deterministic init matching nn.Linear shapes (weights stored [in, out])."""
    ks = jax.random.split(key, 6)

    def linear(kw, kb, fan_in, fan_out):
        bound = 1.0 / jnp.sqrt(fan_in)
        w = jax.random.uniform(kw, (fan_in, fan_out), jnp.float32, -bound, bound)
        b = jax.random.uniform(kb, (fan_out,), jnp.float32, -bound, bound)
        return w, b

    w1, b1 = linear(ks[0], ks[1], input_dim, hidden_dim)
    w2, b2 = linear(ks[2], ks[3], hidden_dim, hidden_dim)
    w3, b3 = linear(ks[4], ks[5], hidden_dim, output_dim)
    return {"w1": w1, "b1": b1, "w2": w2, "b2": b2, "w3": w3, "b3": b3}


def reference_forward(x, p):
    """JAX reference using the same bf16-matmul / f32-accumulate recipe."""
    bf = lambda a: a.astype(jnp.bfloat16)
    h1 = jnp.dot(bf(x), bf(p["w1"]), preferred_element_type=jnp.float32) + p["b1"]
    h1 = jnp.maximum(h1, 0.0)
    h2 = jnp.dot(bf(h1), bf(p["w2"]), preferred_element_type=jnp.float32) + p["b2"]
    h2 = jnp.maximum(h2, 0.0)
    return jnp.dot(bf(h2), bf(p["w3"]), preferred_element_type=jnp.float32) + p["b3"]


if __name__ == "__main__":
    key = jax.random.PRNGKey(0)
    k_x, k_p = jax.random.split(key)

    batch = 8
    input_dim = 16     # state representation dim
    output_dim = 4     # number of actions (Q-values)
    hidden_dim = 128

    params = init_params(k_p, input_dim, output_dim, hidden_dim)
    prepared = prepare_params(params)      # one-time prep, hoisted out of forward
    x = jax.random.normal(k_x, (batch, input_dim), dtype=jnp.float32)

    out = qnetwork_forward(x, prepared)
    out = jax.block_until_ready(out)

    ref = reference_forward(x, params)
    assert out.shape == (batch, output_dim), out.shape
    # bf16 matmul inputs -> loosened tolerance vs. the f32-exact PyTorch path.
    assert jnp.allclose(out, ref, atol=2e-2, rtol=2e-2), "mismatch vs JAX reference"

    print("KERNEL_OK")
</pallas_src>

<mosaic_0001>
module attributes {stable_mosaic.version = 11 : i64} {
  func.func @kernel(%arg0: i32, %arg1: memref<16x16xf32, #tpu.memory_space<vmem>>, %arg2: memref<16x128xbf16, #tpu.memory_space<vmem>>, %arg3: memref<1x128xf32, #tpu.memory_space<vmem>>, %arg4: memref<128x128xbf16, #tpu.memory_space<vmem>>, %arg5: memref<1x128xf32, #tpu.memory_space<vmem>>, %arg6: memref<128x4xbf16, #tpu.memory_space<vmem>>, %arg7: memref<1x4xf32, #tpu.memory_space<vmem>>, %arg8: memref<16x4xf32, #tpu.memory_space<vmem>>) attributes {dimension_semantics = [#tpu.dimension_semantics<parallel>], iteration_bounds = array<i64: 1>, scalar_prefetch = 0 : i64, scratch_operands = 0 : i64, tpu.core_type = #tpu.core_type<tc>, window_params = [{transform_indices = @transform_0, window_bounds = array<i64: 16, 16>}, {pipeline_mode = #tpu.pipeline_mode<synchronous>, transform_indices = @transform_1, window_bounds = array<i64: 16, 128>}, {pipeline_mode = #tpu.pipeline_mode<synchronous>, transform_indices = @transform_2, window_bounds = array<i64: 1, 128>}, {pipeline_mode = #tpu.pipeline_mode<synchronous>, transform_indices = @transform_3, window_bounds = array<i64: 128, 128>}, {pipeline_mode = #tpu.pipeline_mode<synchronous>, transform_indices = @transform_4, window_bounds = array<i64: 1, 128>}, {pipeline_mode = #tpu.pipeline_mode<synchronous>, transform_indices = @transform_5, window_bounds = array<i64: 128, 4>}, {pipeline_mode = #tpu.pipeline_mode<synchronous>, transform_indices = @transform_6, window_bounds = array<i64: 1, 4>}, {transform_indices = @transform_7, window_bounds = array<i64: 16, 4>}]} {
    %c0 = arith.constant 0 : index
    %c0_0 = arith.constant 0 : index
    %0 = vector.load %arg1[%c0, %c0_0] : memref<16x16xf32, #tpu.memory_space<vmem>>, vector<16x16xf32>
    %1 = arith.truncf %0 : vector<16x16xf32> to vector<16x16xbf16>
    %c0_1 = arith.constant 0 : index
    %c0_2 = arith.constant 0 : index
    %2 = vector.load %arg2[%c0_1, %c0_2] : memref<16x128xbf16, #tpu.memory_space<vmem>>, vector<16x128xbf16>
    %cst = arith.constant dense<0.000000e+00> : vector<16x128xf32>
    %3 = tpu.matmul %1, %2, %cst {dimension_numbers = #tpu.dot_dimension_numbers<[1], [0], [0], [1], [0, 0, 1, 1], [], []>} : vector<16x16xbf16>, vector<16x128xbf16>, vector<16x128xf32> -> vector<16x128xf32>
    %4 = arith.truncf %3 : vector<16x128xf32> to vector<16x128xbf16>
    %c0_3 = arith.constant 0 : index
    %c0_4 = arith.constant 0 : index
    %5 = vector.load %arg3[%c0_3, %c0_4] : memref<1x128xf32, #tpu.memory_space<vmem>>, vector<1x128xf32>
    %6 = arith.truncf %5 : vector<1x128xf32> to vector<1x128xbf16>
    %7 = vector.broadcast %6 : vector<1x128xbf16> to vector<16x128xbf16>
    %8 = arith.addf %4, %7 : vector<16x128xbf16>
    %cst_5 = arith.constant 0.000000e+00 : bf16
    %9 = vector.broadcast %cst_5 : bf16 to vector<16x128xbf16>
    %10 = arith.maximumf %8, %9 : vector<16x128xbf16>
    %c0_6 = arith.constant 0 : index
    %c0_7 = arith.constant 0 : index
    %11 = vector.load %arg4[%c0_6, %c0_7] : memref<128x128xbf16, #tpu.memory_space<vmem>>, vector<128x128xbf16>
    %cst_8 = arith.constant dense<0.000000e+00> : vector<16x128xf32>
    %12 = tpu.matmul %10, %11, %cst_8 {dimension_numbers = #tpu.dot_dimension_numbers<[1], [0], [0], [1], [0, 0, 1, 1], [], []>} : vector<16x128xbf16>, vector<128x128xbf16>, vector<16x128xf32> -> vector<16x128xf32>
    %13 = arith.truncf %12 : vector<16x128xf32> to vector<16x128xbf16>
    %c0_9 = arith.constant 0 : index
    %c0_10 = arith.constant 0 : index
    %14 = vector.load %arg5[%c0_9, %c0_10] : memref<1x128xf32, #tpu.memory_space<vmem>>, vector<1x128xf32>
    %15 = arith.truncf %14 : vector<1x128xf32> to vector<1x128xbf16>
    %16 = vector.broadcast %15 : vector<1x128xbf16> to vector<16x128xbf16>
    %17 = arith.addf %13, %16 : vector<16x128xbf16>
    %cst_11 = arith.constant 0.000000e+00 : bf16
    %18 = vector.broadcast %cst_11 : bf16 to vector<16x128xbf16>
    %19 = arith.maximumf %17, %18 : vector<16x128xbf16>
    %c0_12 = arith.constant 0 : index
    %c0_13 = arith.constant 0 : index
    %20 = vector.load %arg6[%c0_12, %c0_13] : memref<128x4xbf16, #tpu.memory_space<vmem>>, vector<128x4xbf16>
    %cst_14 = arith.constant dense<0.000000e+00> : vector<16x4xf32>
    %21 = tpu.matmul %19, %20, %cst_14 {dimension_numbers = #tpu.dot_dimension_numbers<[1], [0], [0], [1], [0, 0, 1, 1], [], []>} : vector<16x128xbf16>, vector<128x4xbf16>, vector<16x4xf32> -> vector<16x4xf32>
    %c0_15 = arith.constant 0 : index
    %c0_16 = arith.constant 0 : index
    %22 = vector.load %arg7[%c0_15, %c0_16] : memref<1x4xf32, #tpu.memory_space<vmem>>, vector<1x4xf32>
    %23 = vector.broadcast %22 : vector<1x4xf32> to vector<16x4xf32>
    %24 = arith.addf %21, %23 : vector<16x4xf32>
    %c0_17 = arith.constant 0 : index
    %c0_18 = arith.constant 0 : index
    %25 = vector.load %arg8[%c0_17, %c0_18] : memref<16x4xf32, #tpu.memory_space<vmem>>, vector<16x4xf32>
    tpu.vector_store %arg8[%c0_17, %c0_18], %24 {strides = array<i32>} : memref<16x4xf32, #tpu.memory_space<vmem>>, vector<16x4xf32>,
    return
  }
  func.func @transform_0(%arg0: i32) -> (i32, i32) {
    %c0_i32 = arith.constant 0 : i32
    %c0_i32_0 = arith.constant 0 : i32
    return %arg0, %c0_i32 : i32, i32
  }
  func.func @transform_1(%arg0: i32) -> (i32, i32) {
    %c0_i32 = arith.constant 0 : i32
    %c0_i32_0 = arith.constant 0 : i32
    %c0_i32_1 = arith.constant 0 : i32
    return %c0_i32, %c0_i32_0 : i32, i32
  }
  func.func @transform_2(%arg0: i32) -> (i32, i32) {
    %c0_i32 = arith.constant 0 : i32
    %c0_i32_0 = arith.constant 0 : i32
    %c0_i32_1 = arith.constant 0 : i32
    return %c0_i32, %c0_i32_0 : i32, i32
  }
  func.func @transform_3(%arg0: i32) -> (i32, i32) {
    %c0_i32 = arith.constant 0 : i32
    %c0_i32_0 = arith.constant 0 : i32
    %c0_i32_1 = arith.constant 0 : i32
    return %c0_i32, %c0_i32_0 : i32, i32
  }
  func.func @transform_4(%arg0: i32) -> (i32, i32) {
    %c0_i32 = arith.constant 0 : i32
    %c0_i32_0 = arith.constant 0 : i32
    %c0_i32_1 = arith.constant 0 : i32
    return %c0_i32, %c0_i32_0 : i32, i32
  }
  func.func @transform_5(%arg0: i32) -> (i32, i32) {
    %c0_i32 = arith.constant 0 : i32
    %c0_i32_0 = arith.constant 0 : i32
    %c0_i32_1 = arith.constant 0 : i32
    return %c0_i32, %c0_i32_0 : i32, i32
  }
  func.func @transform_6(%arg0: i32) -> (i32, i32) {
    %c0_i32 = arith.constant 0 : i32
    %c0_i32_0 = arith.constant 0 : i32
    %c0_i32_1 = arith.constant 0 : i32
    return %c0_i32, %c0_i32_0 : i32, i32
  }
  func.func @transform_7(%arg0: i32) -> (i32, i32) {
    %c0_i32 = arith.constant 0 : i32
    %c0_i32_0 = arith.constant 0 : i32
    return %arg0, %c0_i32 : i32, i32
  }
}

</mosaic_0001>

<bundles_post_ra>
// kernel: tpu_custom_call.1
= control target key start
LH: loop header
LB: loop body
LE: loop exit
PB: predicated region body
PF: predicated region fallthrough
CT: control target
= control target key end

     0   :  { %12 = vsyncpa [#allocation3], 0  ;;  %s657_s0 = inlined_call_operand.hbm [shape: f32[16,16], index: 0, kind: input, shape index: {}]   ;;  %s658_s1 = inlined_call_operand.hbm [shape: bf16[16,128], index: 1, kind: input, shape index: {}]   ;;  %s659_s2 = inlined_call_operand.vmem [shape: f32[1,128], index: 2, kind: input, shape index: {}]   ;;  %s660_s3 = inlined_call_operand.vmem [shape: bf16[128,128], index: 3, kind: input, shape index: {}]   ;;  %s661_s4 = inlined_call_operand.vmem [shape: f32[1,128], index: 4, kind: input, shape index: {}]   ;;  %s662_s5 = inlined_call_operand.vmem [shape: bf16[128,4], index: 5, kind: input, shape index: {}]   ;;  %s663_s6 = inlined_call_operand.vmem [shape: f32[1,4], index: 6, kind: input, shape index: {}]   ;;  %s664_s7 = inlined_call_operand.vmem [shape: f32[16,4], index: 7, kind: output, shape index: {}]  }
   0x1   :  { %13 = vsyncpa [#allocation5], 0  ;;  %s516_s24 = smov [#allocation2]  }
   0x2   :  { %s19_s25 = sshll.u32 %s516_s24, 4  ;;  %s20_s25 = int_to_ptr.vmem [resolvable:$true] %s19_s25 }
   0x3   :  { %s480_s26 = scalar_lea.vmem %s20_s25, 256  ;;  %p485_p1 = scmp.lt.s32.totalorder %s20_s25, %s20_s25 }
   0x4   :  { %p481_p0 = scmp.ne.s32.totalorder %s20_s25, %s480_s26  ;;  %p486_p2 = scmp.lt.s32.totalorder %s480_s26, %s480_s26 }
   0x6   :  { %p487_p3 = por %p486_p2, %p485_p1 }
   0x8   :  { %p488_p4 = pnand %p487_p3, %p481_p0 }
   0xa   :  { %491 = shalt.err (!%p488_p4)
}
   0xb   :  { %s517_s27 = smov 128   ;;  %s518_s28 = smov 8  }
   0xc   :  { %25 = dma.hbm_to_vmem [thread:$0]  %s657_s0, 256, %s20_s25, [#allocation3], %s517_s27, %s517_s27, %s518_s28  }
   0xd   :  { %s519_s8 = smov [#allocation4]  }
   0xe   :  { %s31_s9 = sshll.u32 %s519_s8, 4  ;;  %s32_s9 = int_to_ptr.vmem [resolvable:$true] %s31_s9 }
   0xf   :  { %s500_s10 = scalar_lea.vmem %s32_s9, 128  ;;  %p505_p6 = scmp.lt.s32.totalorder %s32_s9, %s32_s9 }
  0x10   :  { %p501_p5 = scmp.ne.s32.totalorder %s32_s9, %s500_s10  ;;  %p506_p7 = scmp.lt.s32.totalorder %s500_s10, %s500_s10 }
  0x12   :  { %p507_p8 = por %p506_p7, %p505_p6 }
  0x14   :  { %p508_p9 = pnand %p507_p8, %p501_p5 }
  0x16   :  { %511 = shalt.err (!%p508_p9)
}
  0x17   :  { %s520_s11 = smov 64   ;;  %s521_s12 = smov 4  }
  0x18   :  { %37 = dma.hbm_to_vmem [thread:$0]  %s658_s1, 128, %s32_s9, [#allocation5], %s520_s11, %s520_s11, %s521_s12  }
  0x19   :  { %512 = dma.done.wait [#allocation3], 256  }
  0x1a   :  { %513 = vsyncadd [#allocation3], 4294967040 }
  0x1b   :  { %514 = dma.done.wait [#allocation5], 128  }
  0x1c   :  { %515 = vsyncadd [#allocation5], 4294967168  ;;  %v522_v0 = vmov 0.0   ;;  %vm523_vm0 = vmmov 0   ;;  %v455_v1 = vld [vmem:[#allocation4] sm:$0xff]   ;;  %v55_v2 = vld [vmem:[#allocation2] sm:$0xff]  ;;  %v117_v18 = vlaneseq }
  0x1d   :  { %400 = vmatprep.subr.bf16.mxu0 %v522_v0  ;;  %402 = vmatprep.mubr.msk.bf16.mxu0 %vm523_vm0, %v522_v0  ;;  %v56_v3 = vld [vmem:[#allocation2 + $0x8] sm:$0xff]  ;;  %vm66_vm1 = vcmask 130048   ;;  %v456_v5 = vld [vmem:[%s660_s3 + $0x38] sm:$0xff]   ;;  %v457_v6 = vld [vmem:[%s660_s3 + $0x30] sm:$0xff]   ;;  %v524_v31 = vmov 0   ;;  %vm352_vm2 = vcmask 31744  }
  0x1e   :  { %406 = vmatprep.subr.bf16.mxu1 %v522_v0  ;;  %422 = vmatprep.mubr.msk.bf16.mxu1 %vm523_vm0, %v522_v0  ;;  %v57_v4 = vpack.c.bf16 %v56_v3, %v55_v2  ;;  %v458_v7 = vld [vmem:[%s660_s3 + $0x28] sm:$0xff]   ;;  %v459_v8 = vld [vmem:[%s660_s3 + $0x20] sm:$0xff]   ;;  %v460_v9 = vld [vmem:[%s660_s3 + $0x18] sm:$0xff]   ;;  %v118_v21 = vshrl.u32 %v117_v18, 7 }
  0x1f   :  { %401 = vmatpush3.bf16.msra.mxu0 %v455_v1  ;;  %407 = vmatpush3.bf16.msra.mxu1 %v456_v5  ;;  %v461_v10 = vld [vmem:[%s660_s3 + $0x10] sm:$0xff]   ;;  %v462_v11 = vld [vmem:[%s660_s3 + $0x8] sm:$0xff]   ;;  %v463_v12 = vld [vmem:[%s660_s3] sm:$0xff]  }
  0x20   :  { %426 = vmatprep.subr.bf16.mxu0 %v522_v0  ;;  %408 = vmatprep.subr.bf16.mxu1 %v522_v0  ;;  %v464_v13 = vld [vmem:[%s662_s5 + $0x38] sm:$0xff]   ;;  %v465_v14 = vld [vmem:[%s662_s5 + $0x30] sm:$0xff]   ;;  %v466_v15 = vld [vmem:[%s662_s5 + $0x28] sm:$0xff]   ;;  %v119_v23 = vsub.s32 0, %v118_v21 }
  0x21   :  { %v467_v16 = vld [vmem:[%s662_s5 + $0x20] sm:$0xff]   ;;  %v468_v17 = vld [vmem:[%s662_s5 + $0x18] sm:$0xff]   ;;  %v469_v33 = vld [vmem:[%s662_s5 + $0x10] sm:$0xff]  }
  0x22   :  { %403 = vmatmul.mubr.msk.bf16.vlgmr.msra.gmra.mxu0 %vm66_vm1, %v57_v4  ;;  %v112_v19 = vld [vmem:[%s659_s2] sm:$0x1]  ;;  %v470_v34 = vld [vmem:[%s662_s5 + $0x8] sm:$0xff]  }
  0x23   :  { %442 = vmatprep.mubr.msk.bf16.mxu0 %vm523_vm0, %v522_v0  ;;  %409 = vmatpush3.bf16.msra.mxu1 %v457_v6  ;;  %v113_v20 = vpack.c.bf16 %v112_v19, %v112_v19  ;;  %v471_v35 = vld [vmem:[%s662_s5] sm:$0xff]  }
  0x24   :  { %410 = vmatprep.subr.bf16.mxu1 %v522_v0  ;;  %427 = vmatpush3.bf16.msra.mxu0 %v464_v13  ;;  %v229_v36 = vld [vmem:[%s661_s4] sm:$0x1] }
  0x25   :  { %428 = vmatprep.subr.bf16.mxu0 %v522_v0  ;;  %v115_v22 = vpack.i.b16 %v113_v20, %v113_v20  ;;  %v230_v37 = vpack.c.bf16 %v229_v36, %v229_v36  ;;  %v371_v47 = vld [vmem:[%s663_s6] ss:$0 sm:$0xff] }
  0x27   :  { %411 = vmatpush3.bf16.msra.mxu1 %v458_v7  ;;  %v120_v26 = vrot.slane %v115_v22, %v119_v23  ;;  %v232_v38 = vpack.i.b16 %v230_v37, %v230_v37 }
  0x28   :  { %412 = vmatprep.subr.bf16.mxu1 %v522_v0  ;;  %429 = vmatpush3.bf16.msra.mxu0 %v465_v14 }
  0x29   :  { %430 = vmatprep.subr.bf16.mxu0 %v522_v0  ;;  %v237_v41 = vrot.slane %v232_v38, %v119_v23 }
  0x2b   :  { %413 = vmatpush3.bf16.msra.mxu1 %v459_v8 }
  0x2c   :  { %414 = vmatprep.subr.bf16.mxu1 %v522_v0  ;;  %431 = vmatpush3.bf16.msra.mxu0 %v466_v15 }
  0x2d   :  { %432 = vmatprep.subr.bf16.mxu0 %v522_v0 }
  0x2f   :  { %415 = vmatpush3.bf16.msra.mxu1 %v460_v9 }
  0x30   :  { %416 = vmatprep.subr.bf16.mxu1 %v522_v0  ;;  %433 = vmatpush3.bf16.msra.mxu0 %v467_v16 }
  0x31   :  { %434 = vmatprep.subr.bf16.mxu0 %v522_v0 }
  0x33   :  { %417 = vmatpush3.bf16.msra.mxu1 %v461_v10 }
  0x34   :  { %418 = vmatprep.subr.bf16.mxu1 %v522_v0  ;;  %435 = vmatpush3.bf16.msra.mxu0 %v468_v17 }
  0x35   :  { %436 = vmatprep.subr.bf16.mxu0 %v522_v0 }
  0x37   :  { %419 = vmatpush3.bf16.msra.mxu1 %v462_v11 }
  0x38   :  { %420 = vmatprep.subr.bf16.mxu1 %v522_v0  ;;  %437 = vmatpush3.bf16.msra.mxu0 %v469_v33 }
  0x39   :  { %438 = vmatprep.subr.bf16.mxu0 %v522_v0 }
  0x3b   :  { %421 = vmatpush3.bf16.msra.mxu1 %v463_v12 }
  0x3c   :  { %439 = vmatpush3.bf16.msra.mxu0 %v470_v34 }
  0x3d   :  { %440 = vmatprep.subr.bf16.mxu0 %v522_v0 }
  0x40   :  { %441 = vmatpush3.bf16.msra.mxu0 %v471_v35 }
  0xe2   :  { %v104_v24 = vpop.f32.mrf.mxu0 }
  0xe4   :  { %v404_v25 = vpop.f32.mrf.mxu0 }
  0xe6   :  { %v107_v27 = vpop.f32.mrf.mxu0 }
  0xe7   :  { %v111_v28 = vpack.c.bf16 %v107_v27, %v104_v24 }
  0xe8   :  { %v405_v29 = vpop.f32.mrf.mxu0 }
  0xe9   :  { %v121_v30 = vadd.bf16 %v120_v26, %v111_v28 }
  0xeb   :  { %v122_v32 = vmax.bf16 %v524_v31, %v121_v30 }
  0xed   :  { %423 = vmatmul.mubr.bf16.vlgmr.msra.gmra.mxu1 %v122_v32 }
 0x1ad   :  { %v221_v39 = vpop.f32.mrf.mxu1 }
 0x1af   :  { %v424_v40 = vpop.f32.mrf.mxu1 }
 0x1b1   :  { %v224_v42 = vpop.f32.mrf.mxu1 }
 0x1b2   :  { %v228_v43 = vpack.c.bf16 %v224_v42, %v221_v39 }
 0x1b3   :  { %v425_v44 = vpop.f32.mrf.mxu1 }
 0x1b4   :  { %v238_v45 = vadd.bf16 %v237_v41, %v228_v43 }
 0x1b6   :  { %v239_v46 = vmax.bf16 %v524_v31, %v238_v45 }
 0x1b8   :  { %443 = vmatmul.mubr.bf16.vlgmr.msra.gmra.mxu0 %v239_v46 }
 0x278   :  { %v345_v48 = vpop.f32.mrf.mxu0 }
 0x279   :  { %v346_v49 = vadd.f32 %v371_v47, %v345_v48 }
 0x27a   :  { %v444_v50 = vpop.f32.mrf.mxu0 }
 0x27b   :  { %353 = vst.msk [vmem:[%s664_s7] sm:$0xff] %vm352_vm2, %v346_v49 }
 0x27c   :  { %v348_v51 = vpop.f32.mrf.mxu0 }
 0x27d   :  { %v349_v52 = vadd.f32 %v371_v47, %v348_v51 }
 0x27e   :  { %v445_v53 = vpop.f32.mrf.mxu0 }
 0x27f   :  { %354 = vst.msk [vmem:[%s664_s7 + $0x8] sm:$0xff] %vm352_vm2, %v349_v52 }
 0x280   :  { %359 = vsyncpa [#allocation3], 1 }
 0x281   :  { %360 = vsyncpa [#allocation5], 1 }

</bundles_post_ra>
